<compile_context>
chip_gen: v6e
topology: v6e:2x2x1
jax: 0.10.0
libtpu: 0.0.40
codegen_flags: <defaults>
</compile_context>

<pallas_src>
import functools

import numpy as np
import jax
import jax.numpy as jnp
from jax import lax
from jax.experimental import pallas as pl
from jax.experimental.pallas import tpu as pltpu


def _conv_rows_kernel(x_ref, w_ref, b_ref, o_ref, *, k):
    """One row-block of the banded conv + fused bias + leaky-ReLU.

    x_ref : (rows, Wp*Cin)          padded-input rows (one per (image, y'))
    w_ref : (k, Wp*Cin, Wout*Cout)  block-banded weights, one per vertical tap
    b_ref : (1, Wout*Cout)          bias tiled over output pixels
    o_ref : (rows, Wout*Cout)       output rows (same row indexing as x_ref;
                                    rows with y' >= Hout per image are dead
                                    and sliced away by the wrapper)
    """
    rows = x_ref.shape[0]
    x = x_ref[...]
    # Accumulate directly in the (VMEM-resident) output block; init with bias.
    o_ref[...] = jnp.broadcast_to(b_ref[...], o_ref.shape)
    for p in range(k):
        # One MXU matmul covers all horizontal taps + the Cin contraction for
        # vertical tap p, for every row in the block.
        fp = jnp.dot(x, w_ref[p], preferred_element_type=jnp.float32)
        # Output row r gets the contribution of padded-input row r + p.
        o_ref[0:rows - p, :] = o_ref[0:rows - p, :] + fp[p:rows, :]
    y = o_ref[...]
    # Fused elementwise: where(x2 > 0, x2, 0.25 * x2)
    o_ref[...] = jnp.where(y > 0.0, y, y * 0.25)


def _pack_params(weight, bias, h, w):
    """Pack ConvTranspose2d weight (Cin,Cout,k,k) + bias into the block-banded
    matmul layout used by the kernel.  Runs once (outside the jitted path)."""
    cin, cout, kh, kw = weight.shape
    assert kh == kw
    k = kh
    wp = w + 2 * (k - 1)
    wout = w + k - 1
    kwc = wp * cin          # contraction depth per input row
    wc = wout * cout        # lane-dense packed output-row width

    # Transposed conv == VALID correlation with the spatially flipped kernel:
    #   wf[p, q, ci, co] = weight[ci, co, k-1-p, k-1-q]
    wf = jnp.transpose(weight[:, :, ::-1, ::-1], (2, 3, 0, 1))  # (k,k,Cin,Cout)
    wf = wf.reshape(k, k * cin, cout).astype(jnp.float32)       # j = q*Cin + ci

    # Constant block-banded selector: S[x, j, x*Cin + j] = 1.
    sel = np.zeros((wout, k * cin, kwc), np.float32)
    eye = np.eye(k * cin, dtype=np.float32)
    for x in range(wout):
        sel[x, :, x * cin:x * cin + k * cin] = eye
    sel = jnp.asarray(sel)

    # W_band[p, i, x*Cout + co] = wf[p, j, co]  where  i = x*Cin + j.
    w_band = jnp.einsum('xji,pjc->pixc', sel, wf).reshape(k, kwc, wc)
    bias_row = jnp.tile(bias.astype(jnp.float32), wout).reshape(1, wc)
    return w_band, bias_row


def make_conv_transpose_leaky(weight, bias, input_hw, *, vmem_budget_bytes=8 << 20):
    """Returns a jitted fn (N, Cin, H, W) -> (N, Cout, H+k-1, W+k-1) computing
    ConvTranspose2d(stride=1, pad=0, bias) followed by where(y>0, y, 0.25*y)."""
    h, w = input_hw
    cin, cout, k, _ = weight.shape
    hp, wp = h + 2 * (k - 1), w + 2 * (k - 1)
    hout, wout = h + k - 1, w + k - 1
    kwc, wc = wp * cin, wout * cout

    # Weights / bias packed ONCE, eagerly (not in the per-call jitted path).
    w_band, bias_row = _pack_params(weight, bias, h, w)
    kernel = functools.partial(_conv_rows_kernel, k=k)

    @jax.jit
    def apply(x_nchw):
        n = x_nchw.shape[0]
        assert x_nchw.shape == (n, cin, h, w)

        # ---- tiny per-call glue (no im2col, no HBM patch matrix) ----------
        # TODO(synk): the NCHW<->NHWC transposes stay as (cheap) XLA ops; they
        # could be folded into the kernel with an in-VMEM relayout if needed.
        x2d = jnp.transpose(x_nchw, (0, 2, 3, 1)).astype(jnp.float32)   # NHWC
        x2d = jnp.pad(x2d, ((0, 0), (k - 1, k - 1), (k - 1, k - 1), (0, 0)))
        x2d = x2d.reshape(n * hp, kwc)                # free row-major reshape

        # ---- VMEM-budgeted row tile: nb images per grid step --------------
        bytes_per_img = hp * (kwc + wc) * 4 * 2       # in + out, double-buffered
        nb = max(1, min(n, vmem_budget_bytes // max(1, bytes_per_img)))
        if nb < n:
            # keep the block sublane-aligned when it is not the full array
            while (nb * hp) % 8 != 0 and nb < n:
                nb += 1
        block_rows = nb * hp
        num_blocks = pl.cdiv(n * hp, block_rows)      # == 1 at the test shape
        rows_pad = num_blocks * block_rows
        if rows_pad != n * hp:
            x2d = jnp.pad(x2d, ((0, rows_pad - n * hp), (0, 0)))

        flops = 2 * rows_pad * kwc * wc * k
        bytes_accessed = 4 * (rows_pad * (kwc + wc) + k * kwc * wc + wc)

        out2d = pl.pallas_call(
            kernel,
            out_shape=jax.ShapeDtypeStruct((rows_pad, wc), jnp.float32),
            grid_spec=pltpu.PrefetchScalarGridSpec(
                num_scalar_prefetch=0,
                grid=(num_blocks,),
                in_specs=[
                    pl.BlockSpec((block_rows, kwc), lambda i: (i, 0)),
                    pl.BlockSpec((k, kwc, wc), lambda i: (0, 0, 0)),
                    pl.BlockSpec((1, wc), lambda i: (0, 0)),
                ],
                out_specs=pl.BlockSpec((block_rows, wc), lambda i: (i, 0)),
            ),
            compiler_params=pltpu.CompilerParams(
                dimension_semantics=("parallel",)),   # shards blocks on v7x
            cost_estimate=pl.CostEstimate(
                flops=flops, transcendentals=0, bytes_accessed=bytes_accessed),
        )(x2d, w_band, bias_row)

        # Rows are (image, y') with y' in [0, Hp); keep y' < Hout, back to NCHW.
        out = out2d[:n * hp].reshape(n, hp, wout, cout)[:, :hout]
        return jnp.transpose(out, (0, 3, 1, 2))

    return apply


def _reference(x_nchw, weight_torch, bias):
    """Pure-JAX reference: ConvTranspose2d(stride=1, pad=0, bias) + where."""
    cin, cout, k, _ = weight_torch.shape
    w_oihw = jnp.transpose(weight_torch[:, :, ::-1, ::-1], (1, 0, 2, 3))
    y = lax.conv_general_dilated(
        x_nchw, w_oihw, window_strides=(1, 1),
        padding=[(k - 1, k - 1), (k - 1, k - 1)],
        dimension_numbers=("NCHW", "OIHW", "NCHW"))
    y = y + bias[None, :, None, None]
    return jnp.where(y > 0, y, y * 0.25)


if __name__ == "__main__":
    key = jax.random.PRNGKey(0)
    kx, kw_, kb = jax.random.split(key, 3)

    # Small shapes consistent with the module: Cin=3 fixed by the input,
    # Cout=8, k=3 for the ConvTranspose2d, batch=2 for a quick check.
    N, CIN, H, W = 2, 3, 16, 16
    COUT, K = 8, 3

    x1 = jax.random.normal(kx, (N, CIN, H, W), dtype=jnp.float32)
    # ConvTranspose2d weight layout: (in_channels, out_channels, kH, kW)
    weight = 0.1 * jax.random.normal(kw_, (CIN, COUT, K, K), dtype=jnp.float32)
    bias = 0.1 * jax.random.normal(kb, (COUT,), dtype=jnp.float32)

    conv = make_conv_transpose_leaky(weight, bias, (H, W))
    out = conv(x1)
    jax.block_until_ready(out)

    ref = _reference(x1, weight, bias)
    assert out.shape == (N, COUT, H + K - 1, W + K - 1)
    err = float(jnp.max(jnp.abs(out - ref)))
    assert jnp.allclose(out, ref, atol=1e-4, rtol=1e-4), err

    print("KERNEL_OK")
</pallas_src>

<mosaic_0001>
module attributes {stable_mosaic.version = 11 : i64} {
  func.func @_conv_rows_kernel(%arg0: i32, %arg1: memref<40x60xf32, #tpu.memory_space<vmem>>, %arg2: memref<3x60x144xf32, #tpu.memory_space<vmem>>, %arg3: memref<1x144xf32, #tpu.memory_space<vmem>>, %arg4: memref<40x144xf32, #tpu.memory_space<vmem>>) attributes {dimension_semantics = [#tpu.dimension_semantics<parallel>], iteration_bounds = array<i64: 1>, scalar_prefetch = 0 : i64, scratch_operands = 0 : i64, tpu.core_type = #tpu.core_type<tc>, window_params = [{transform_indices = @transform_0, window_bounds = array<i64: 40, 60>}, {pipeline_mode = #tpu.pipeline_mode<synchronous>, transform_indices = @transform_1, window_bounds = array<i64: 3, 60, 144>}, {pipeline_mode = #tpu.pipeline_mode<synchronous>, transform_indices = @transform_2, window_bounds = array<i64: 1, 144>}, {transform_indices = @transform_3, window_bounds = array<i64: 40, 144>}]} {
    %c0 = arith.constant 0 : index
    %c0_0 = arith.constant 0 : index
    %0 = vector.load %arg1[%c0, %c0_0] : memref<40x60xf32, #tpu.memory_space<vmem>>, vector<40x60xf32>
    %c0_1 = arith.constant 0 : index
    %c0_2 = arith.constant 0 : index
    %1 = vector.load %arg3[%c0_1, %c0_2] : memref<1x144xf32, #tpu.memory_space<vmem>>, vector<1x144xf32>
    %2 = vector.shape_cast %1 : vector<1x144xf32> to vector<1x144xf32>
    %3 = vector.broadcast %2 : vector<1x144xf32> to vector<40x144xf32>
    %c0_3 = arith.constant 0 : index
    %c0_4 = arith.constant 0 : index
    %4 = vector.load %arg4[%c0_3, %c0_4] : memref<40x144xf32, #tpu.memory_space<vmem>>, vector<40x144xf32>
    tpu.vector_store %arg4[%c0_3, %c0_4], %3 {strides = array<i32>} : memref<40x144xf32, #tpu.memory_space<vmem>>, vector<40x144xf32>,
    %c0_5 = arith.constant 0 : index
    %c0_6 = arith.constant 0 : index
    %c0_7 = arith.constant 0 : index
    %5 = vector.load %arg2[%c0_5, %c0_6, %c0_7] : memref<3x60x144xf32, #tpu.memory_space<vmem>>, vector<1x60x144xf32>
    %6 = vector.shape_cast %5 : vector<1x60x144xf32> to vector<60x144xf32>
    %cst = arith.constant dense<0.000000e+00> : vector<40x144xf32>
    %7 = tpu.matmul %0, %6, %cst {dimension_numbers = #tpu.dot_dimension_numbers<[1], [0], [0], [1], [0, 0, 1, 1], [], []>} : vector<40x60xf32>, vector<60x144xf32>, vector<40x144xf32> -> vector<40x144xf32>
    %c0_8 = arith.constant 0 : index
    %c0_9 = arith.constant 0 : index
    %8 = vector.load %arg4[%c0_8, %c0_9] : memref<40x144xf32, #tpu.memory_space<vmem>>, vector<40x144xf32>
    %9 = arith.addf %8, %7 : vector<40x144xf32>
    %c0_10 = arith.constant 0 : index
    %c0_11 = arith.constant 0 : index
    %10 = vector.load %arg4[%c0_10, %c0_11] : memref<40x144xf32, #tpu.memory_space<vmem>>, vector<40x144xf32>
    tpu.vector_store %arg4[%c0_10, %c0_11], %9 {strides = array<i32>} : memref<40x144xf32, #tpu.memory_space<vmem>>, vector<40x144xf32>,
    %c1 = arith.constant 1 : index
    %c0_12 = arith.constant 0 : index
    %c0_13 = arith.constant 0 : index
    %11 = vector.load %arg2[%c1, %c0_12, %c0_13] : memref<3x60x144xf32, #tpu.memory_space<vmem>>, vector<1x60x144xf32>
    %12 = vector.shape_cast %11 : vector<1x60x144xf32> to vector<60x144xf32>
    %cst_14 = arith.constant dense<0.000000e+00> : vector<40x144xf32>
    %13 = tpu.matmul %0, %12, %cst_14 {dimension_numbers = #tpu.dot_dimension_numbers<[1], [0], [0], [1], [0, 0, 1, 1], [], []>} : vector<40x60xf32>, vector<60x144xf32>, vector<40x144xf32> -> vector<40x144xf32>
    %c0_15 = arith.constant 0 : index
    %c0_16 = arith.constant 0 : index
    %14 = vector.load %arg4[%c0_15, %c0_16] : memref<40x144xf32, #tpu.memory_space<vmem>>, vector<39x144xf32>
    %15 = vector.extract_strided_slice %13 {offsets = [1, 0], sizes = [39, 144], strides = [1, 1]} : vector<40x144xf32> to vector<39x144xf32>
    %16 = arith.addf %14, %15 : vector<39x144xf32>
    %c0_17 = arith.constant 0 : index
    %c0_18 = arith.constant 0 : index
    %17 = vector.load %arg4[%c0_17, %c0_18] : memref<40x144xf32, #tpu.memory_space<vmem>>, vector<39x144xf32>
    tpu.vector_store %arg4[%c0_17, %c0_18], %16 {strides = array<i32>} : memref<40x144xf32, #tpu.memory_space<vmem>>, vector<39x144xf32>,
    %c2 = arith.constant 2 : index
    %c0_19 = arith.constant 0 : index
    %c0_20 = arith.constant 0 : index
    %18 = vector.load %arg2[%c2, %c0_19, %c0_20] : memref<3x60x144xf32, #tpu.memory_space<vmem>>, vector<1x60x144xf32>
    %19 = vector.shape_cast %18 : vector<1x60x144xf32> to vector<60x144xf32>
    %cst_21 = arith.constant dense<0.000000e+00> : vector<40x144xf32>
    %20 = tpu.matmul %0, %19, %cst_21 {dimension_numbers = #tpu.dot_dimension_numbers<[1], [0], [0], [1], [0, 0, 1, 1], [], []>} : vector<40x60xf32>, vector<60x144xf32>, vector<40x144xf32> -> vector<40x144xf32>
    %c0_22 = arith.constant 0 : index
    %c0_23 = arith.constant 0 : index
    %21 = vector.load %arg4[%c0_22, %c0_23] : memref<40x144xf32, #tpu.memory_space<vmem>>, vector<38x144xf32>
    %22 = vector.extract_strided_slice %20 {offsets = [2, 0], sizes = [38, 144], strides = [1, 1]} : vector<40x144xf32> to vector<38x144xf32>
    %23 = arith.addf %21, %22 : vector<38x144xf32>
    %c0_24 = arith.constant 0 : index
    %c0_25 = arith.constant 0 : index
    %24 = vector.load %arg4[%c0_24, %c0_25] : memref<40x144xf32, #tpu.memory_space<vmem>>, vector<38x144xf32>
    tpu.vector_store %arg4[%c0_24, %c0_25], %23 {strides = array<i32>} : memref<40x144xf32, #tpu.memory_space<vmem>>, vector<38x144xf32>,
    %c0_26 = arith.constant 0 : index
    %c0_27 = arith.constant 0 : index
    %25 = vector.load %arg4[%c0_26, %c0_27] : memref<40x144xf32, #tpu.memory_space<vmem>>, vector<40x144xf32>
    %cst_28 = arith.constant 0.000000e+00 : f32
    %26 = vector.broadcast %cst_28 : f32 to vector<40x144xf32>
    %27 = arith.cmpf ogt, %25, %26 : vector<40x144xf32>
    %cst_29 = arith.constant 2.500000e-01 : f32
    %28 = vector.broadcast %cst_29 : f32 to vector<40x144xf32>
    %29 = arith.mulf %25, %28 : vector<40x144xf32>
    %30 = arith.select %27, %25, %29 : vector<40x144xi1>, vector<40x144xf32>
    %c0_30 = arith.constant 0 : index
    %c0_31 = arith.constant 0 : index
    %31 = vector.load %arg4[%c0_30, %c0_31] : memref<40x144xf32, #tpu.memory_space<vmem>>, vector<40x144xf32>
    tpu.vector_store %arg4[%c0_30, %c0_31], %30 {strides = array<i32>} : memref<40x144xf32, #tpu.memory_space<vmem>>, vector<40x144xf32>,
    return
  }
  func.func @transform_0(%arg0: i32) -> (i32, i32) {
    %c0_i32 = arith.constant 0 : i32
    %c0_i32_0 = arith.constant 0 : i32
    return %arg0, %c0_i32 : i32, i32
  }
  func.func @transform_1(%arg0: i32) -> (i32, i32, i32) {
    %c0_i32 = arith.constant 0 : i32
    %c0_i32_0 = arith.constant 0 : i32
    %c0_i32_1 = arith.constant 0 : i32
    %c0_i32_2 = arith.constant 0 : i32
    return %c0_i32, %c0_i32_0, %c0_i32_1 : i32, i32, i32
  }
  func.func @transform_2(%arg0: i32) -> (i32, i32) {
    %c0_i32 = arith.constant 0 : i32
    %c0_i32_0 = arith.constant 0 : i32
    %c0_i32_1 = arith.constant 0 : i32
    return %c0_i32, %c0_i32_0 : i32, i32
  }
  func.func @transform_3(%arg0: i32) -> (i32, i32) {
    %c0_i32 = arith.constant 0 : i32
    %c0_i32_0 = arith.constant 0 : i32
    return %arg0, %c0_i32 : i32, i32
  }
}

</mosaic_0001>

<bundles_post_ra>
// kernel: apply.1
= control target key start
LH: loop header
LB: loop body
LE: loop exit
PB: predicated region body
PF: predicated region fallthrough
CT: control target
= control target key end

     0   :  { %vm74_vm0 = vcmask 1043456   ;;  %v706_v3 = vmov 0.0   ;;  %v21_v23 = vlaneseq  ;;  %vm58_vm1 = vcmask 490496   ;;  %s1176_s1 = inlined_call_operand.vmem [shape: f32[3,60,144], index: 1, kind: input, shape index: {}]   ;;  %s1177_s0 = inlined_call_operand.vmem [shape: f32[40,60], index: 0, kind: input, shape index: {}]   ;;  %s1178_s2 = inlined_call_operand.vmem [shape: f32[1,144], index: 2, kind: input, shape index: {}]   ;;  %s1179_s3 = inlined_call_operand.vmem [shape: f32[40,144], index: 3, kind: output, shape index: {}]  }
   0x1   :  { %v57_v0 = vld [vmem:[%s1176_s1 + $0x78] sm:$0xf]  ;;  %v56_v1 = vld [vmem:[%s1176_s1 + $0x70] sm:$0xf]  ;;  %145 = vmatprep.mubr.f32.mxu0 %v706_v3  ;;  %293 = vmatprep.mubr.f32.mxu1 %v706_v3  ;;  %v55_v4 = vld [vmem:[%s1176_s1 + $0x68] sm:$0xff]  ;;  %vm32_vm2 = vcmask 130048  }
   0x2   :  { %v658_v2 = vld [vmem:[%s1176_s1 + $0xf8] sm:$0xf]  ;;  %636 = vmatprep.subr.msk.mxu0 %vm74_vm0, %v57_v0  ;;  %v657_v5 = vld [vmem:[%s1176_s1 + $0xf0] sm:$0xf]  ;;  %v54_v6 = vld [vmem:[%s1176_s1 + $0x60] sm:$0xff]  ;;  %v823_v32 = vshrl.u32 %v21_v23, 7 }
   0x3   :  { %659 = vmatprep.subr.msk.mxu1 %vm74_vm0, %v658_v2  ;;  %637 = vmatpush1.msk.msra.mxu0 %vm74_vm0, %v56_v1  ;;  %v656_v7 = vld [vmem:[%s1176_s1 + $0xe8] sm:$0xff]  ;;  %v53_v8 = vld [vmem:[%s1176_s1 + $0x58] sm:$0xff]  ;;  %v655_v9 = vld [vmem:[%s1176_s1 + $0xe0] sm:$0xff]  ;;  %vm344_vm3 = vcmask 1046528   ;;  %vm392_vm4 = vcmask 129024   ;;  %vm532_vm5 = vcmask 1045504  }
   0x4   :  { %660 = vmatpush1.msk.msra.mxu1 %vm74_vm0, %v657_v5  ;;  %99 = vmatprep.subr.mxu0 %v55_v4  ;;  %v52_v10 = vld [vmem:[%s1176_s1 + $0x50] sm:$0xff]  ;;  %v654_v11 = vld [vmem:[%s1176_s1 + $0xd8] sm:$0xff]  ;;  %v51_v12 = vld [vmem:[%s1176_s1 + $0x48] sm:$0xff]  ;;  %v23_v36 = vsub.s32 0, %v823_v32  ;;  %v27_v59 = vsub.s32 1, %v823_v32  ;;  %vm580_vm8 = vcmask 128000  }
   0x5   :  { %247 = vmatprep.subr.mxu1 %v656_v7  ;;  %100 = vmatpush1.msra.mxu0 %v54_v6  ;;  %v653_v13 = vld [vmem:[%s1176_s1 + $0xd0] sm:$0xff]  ;;  %v652_v14 = vld [vmem:[%s1176_s1 + $0xc8] sm:$0xff]  ;;  %v50_v15 = vld [vmem:[%s1176_s1 + $0x40] sm:$0xff] }
   0x6   :  { %248 = vmatpush1.msra.mxu1 %v655_v9  ;;  %101 = vmatprep.subr.mxu0 %v53_v8  ;;  %v651_v16 = vld [vmem:[%s1176_s1 + $0xc0] sm:$0xff]  ;;  %v49_v17 = vld [vmem:[%s1176_s1 + $0x38] sm:$0xff]  ;;  %v48_v19 = vld [vmem:[%s1176_s1 + $0x30] sm:$0xff] }
   0x7   :  { %249 = vmatprep.subr.mxu1 %v654_v11  ;;  %102 = vmatpush1.msra.mxu0 %v52_v10  ;;  %v650_v18 = vld [vmem:[%s1176_s1 + $0xb8] sm:$0xff]  ;;  %v649_v20 = vld [vmem:[%s1176_s1 + $0xb0] sm:$0xff]  ;;  %v47_v21 = vld [vmem:[%s1176_s1 + $0x28] sm:$0xff] }
   0x8   :  { %250 = vmatpush1.msra.mxu1 %v653_v13  ;;  %103 = vmatprep.subr.mxu0 %v51_v12  ;;  %v648_v22 = vld [vmem:[%s1176_s1 + $0xa8] sm:$0xff]  ;;  %v46_v24 = vld [vmem:[%s1176_s1 + $0x20] sm:$0xff]  ;;  %v45_v26 = vld [vmem:[%s1176_s1 + $0x18] sm:$0xff] }
   0x9   :  { %251 = vmatprep.subr.mxu1 %v652_v14  ;;  %104 = vmatpush1.msra.mxu0 %v50_v15  ;;  %v647_v25 = vld [vmem:[%s1176_s1 + $0xa0] sm:$0xff]  ;;  %v646_v27 = vld [vmem:[%s1176_s1 + $0x98] sm:$0xff]  ;;  %v44_v28 = vld [vmem:[%s1176_s1 + $0x10] sm:$0xff] }
   0xa   :  { %252 = vmatpush1.msra.mxu1 %v651_v16  ;;  %105 = vmatprep.subr.mxu0 %v49_v17  ;;  %v645_v29 = vld [vmem:[%s1176_s1 + $0x90] sm:$0xff]  ;;  %v43_v30 = vld [vmem:[%s1176_s1 + $0x8] sm:$0xff]  ;;  %v42_v33 = vld [vmem:[%s1176_s1] sm:$0xff] }
   0xb   :  { %253 = vmatprep.subr.mxu1 %v650_v18  ;;  %106 = vmatpush1.msra.mxu0 %v48_v19  ;;  %v644_v31 = vld [vmem:[%s1176_s1 + $0x88] sm:$0xff]  ;;  %v643_v34 = vld [vmem:[%s1176_s1 + $0x80] sm:$0xff]  ;;  %v681_v37 = vld [vmem:[%s1176_s1 + $0x178] sm:$0xf] }
   0xc   :  { %254 = vmatpush1.msra.mxu1 %v649_v20  ;;  %107 = vmatprep.subr.mxu0 %v47_v21  ;;  %v834_v35 = vld [vmem:[%s1177_s0] sm:$0xff]  ;;  %v680_v38 = vld [vmem:[%s1176_s1 + $0x170] sm:$0xf]  ;;  %v856_v40 = vld [vmem:[%s1177_s0 + $0x8] sm:$0xff] }
   0xd   :  { %255 = vmatprep.subr.mxu1 %v648_v22  ;;  %108 = vmatpush1.msra.mxu0 %v46_v24  ;;  %v850_v39 = vld [vmem:[%s1178_s2] sm:$0x3]  ;;  %v679_v42 = vld [vmem:[%s1176_s1 + $0x168] sm:$0xff]  ;;  %v677_v44 = vld [vmem:[%s1176_s1 + $0x158] sm:$0xff] }
   0xe   :  { %256 = vmatpush1.msra.mxu1 %v647_v25  ;;  %109 = vmatprep.subr.mxu0 %v45_v26  ;;  %v860_v41 = vrot.slane %v850_v39, %v23_v36  ;;  %v678_v43 = vld [vmem:[%s1176_s1 + $0x160] sm:$0xff]  ;;  %v16_v45 = vld [vmem:[%s1177_s0 + $0x10] sm:$0xff]  ;;  %v675_v47 = vld [vmem:[%s1176_s1 + $0x148] sm:$0xff]  ;;  %v28_v60 = vrot.slane %v850_v39, %v27_v59 }
   0xf   :  { %257 = vmatprep.subr.mxu1 %v646_v27  ;;  %110 = vmatpush1.msra.mxu0 %v44_v28  ;;  %v676_v46 = vld [vmem:[%s1176_s1 + $0x150] sm:$0xff]  ;;  %v674_v48 = vld [vmem:[%s1176_s1 + $0x140] sm:$0xff]  ;;  %v17_v49 = vld [vmem:[%s1177_s0 + $0x18] sm:$0xff] }
  0x10   :  { %258 = vmatpush1.msra.mxu1 %v645_v29  ;;  %111 = vmatprep.subr.mxu0 %v43_v30  ;;  %v673_v50 = vld [vmem:[%s1176_s1 + $0x138] sm:$0xff]  ;;  %v672_v51 = vld [vmem:[%s1176_s1 + $0x130] sm:$0xff]  ;;  %v671_v52 = vld [vmem:[%s1176_s1 + $0x128] sm:$0xff]  ;;  %33 = vst.msk [vmem:[%s1179_s3 + $0x8] sm:$0xff] %vm32_vm2, %v28_v60 }
  0x11   :  { %259 = vmatprep.subr.mxu1 %v644_v31  ;;  %112 = vmatpush1.msra.mxu0 %v42_v33  ;;  %v670_v53 = vld [vmem:[%s1176_s1 + $0x120] sm:$0xff]  ;;  %v669_v55 = vld [vmem:[%s1176_s1 + $0x118] sm:$0xff]  ;;  %v668_v56 = vld [vmem:[%s1176_s1 + $0x110] sm:$0xff]  ;;  %35 = vst.msk [vmem:[%s1179_s3 + $0x18] sm:$0xff] %vm32_vm2, %v28_v60 }
  0x12   :  { %260 = vmatpush1.msra.mxu1 %v643_v34  ;;  %638 = vmatmul.mubr.msk.f32.vlgmr.msra.gmra.mxu0 %vm58_vm1, %v834_v35  ;;  %v18_v54 = vld [vmem:[%s1177_s0 + $0x20] sm:$0xff]  ;;  %v667_v57 = vld [vmem:[%s1176_s1 + $0x108] sm:$0xff]  ;;  %37 = vst.msk [vmem:[%s1179_s3 + $0x28] sm:$0xff] %vm32_vm2, %v28_v60  ;;  %39 = vst.msk [vmem:[%s1179_s3 + $0x38] sm:$0xff] %vm32_vm2, %v28_v60 }
  0x13   :  { %661 = vmatmul.mubr.msk.f32.vlgmr.msra.gmra.mxu1 %vm58_vm1, %v834_v35  ;;  %151 = vmatprep.mubr.f32.mxu0 %v706_v3  ;;  %v666_v58 = vld [vmem:[%s1176_s1 + $0x100] sm:$0xff]  ;;  %41 = vst.msk [vmem:[%s1179_s3 + $0x48] sm:$0xff] %vm32_vm2, %v28_v60 }
  0x14   :  { %299 = vmatprep.mubr.f32.mxu1 %v706_v3  ;;  %682 = vmatprep.subr.msk.mxu0 %vm74_vm0, %v681_v37 }
  0x15   :  { %689 = vmatprep.subr.msk.mxu1 %vm74_vm0, %v681_v37  ;;  %683 = vmatpush1.msk.msra.mxu0 %vm74_vm0, %v680_v38 }
  0x16   :  { %697 = vmatpush1.msk.msra.mxu1 %vm74_vm0, %v680_v38  ;;  %639 = vmatmul.mubr.msk.f32.gmra.mxu0 %vm58_vm1, %v856_v40 }
  0x17   :  { %662 = vmatmul.mubr.msk.f32.gmra.mxu1 %vm58_vm1, %v856_v40  ;;  %435 = vmatprep.subr.mxu0 %v679_v42  ;;  %v177_v63 = vld [vmem:[%s1179_s3 + $0x8] sm:$0xff] }
  0x18   :  { %157 = vmatprep.mubr.f32.mxu0 %v706_v3  ;;  %436 = vmatpush1.msra.mxu0 %v678_v43  ;;  %v179_v5 = vld [vmem:[%s1179_s3 + $0x18] sm:$0xff] }
  0x19   :  { %305 = vmatprep.mubr.f32.mxu1 %v706_v3  ;;  %437 = vmatprep.subr.mxu0 %v677_v44  ;;  %v181_v13 = vld [vmem:[%s1179_s3 + $0x28] sm:$0xff]  ;;  %v183_v21 = vld [vmem:[%s1179_s3 + $0x38] sm:$0xff] }
  0x1a   :  { %690 = vmatprep.subr.mxu1 %v679_v42  ;;  %640 = vmatmul.mubr.msk.f32.gmra.mxu0 %vm58_vm1, %v16_v45  ;;  %v185_v32 = vld [vmem:[%s1179_s3 + $0x48] sm:$0xff] }
  0x1b   :  { %663 = vmatmul.mubr.msk.f32.gmra.mxu1 %vm58_vm1, %v16_v45  ;;  %438 = vmatpush1.msra.mxu0 %v676_v46 }
  0x1c   :  { %698 = vmatpush1.msra.mxu1 %v678_v43  ;;  %439 = vmatprep.subr.mxu0 %v675_v47 }
  0x1d   :  { %163 = vmatprep.mubr.f32.mxu0 %v706_v3  ;;  %691 = vmatprep.subr.mxu1 %v677_v44 }
  0x1e   :  { %440 = vmatpush1.msra.mxu0 %v674_v48  ;;  %311 = vmatprep.mubr.f32.mxu1 %v706_v3 }
  0x1f   :  { %641 = vmatmul.mubr.msk.f32.gmra.mxu0 %vm58_vm1, %v17_v49  ;;  %699 = vmatpush1.msra.mxu1 %v676_v46 }
  0x20   :  { %441 = vmatprep.subr.mxu0 %v673_v50  ;;  %664 = vmatmul.mubr.msk.f32.gmra.mxu1 %vm58_vm1, %v17_v49 }
  0x21   :  { %692 = vmatprep.subr.mxu1 %v675_v47  ;;  %442 = vmatpush1.msra.mxu0 %v672_v51 }
  0x22   :  { %700 = vmatpush1.msra.mxu1 %v674_v48  ;;  %443 = vmatprep.subr.mxu0 %v671_v52 }
  0x23   :  { %169 = vmatprep.mubr.f32.mxu0 %v706_v3  ;;  %693 = vmatprep.subr.mxu1 %v673_v50 }
  0x24   :  { %444 = vmatpush1.msra.mxu0 %v670_v53  ;;  %317 = vmatprep.mubr.f32.mxu1 %v706_v3 }
  0x25   :  { %642 = vmatmul.mubr.msk.f32.gmra.mxu0 %vm58_vm1, %v18_v54  ;;  %701 = vmatpush1.msra.mxu1 %v672_v51 }
  0x26   :  { %445 = vmatprep.subr.mxu0 %v669_v55  ;;  %665 = vmatmul.mubr.msk.f32.gmra.mxu1 %vm58_vm1, %v18_v54 }
  0x27   :  { %694 = vmatprep.subr.mxu1 %v671_v52  ;;  %446 = vmatpush1.msra.mxu0 %v668_v56 }
  0x28   :  { %702 = vmatpush1.msra.mxu1 %v670_v53  ;;  %447 = vmatprep.subr.mxu0 %v667_v57 }
  0x29   :  { %695 = vmatprep.subr.mxu1 %v669_v55  ;;  %448 = vmatpush1.msra.mxu0 %v666_v58 }
  0x2a   :  { %481 = vmatprep.mubr.f32.mxu0 %v706_v3  ;;  %703 = vmatpush1.msra.mxu1 %v668_v56 }
  0x2b   :  { %684 = vmatmul.mubr.msk.f32.vlgmr.msra.gmra.mxu0 %vm58_vm1, %v834_v35  ;;  %696 = vmatprep.subr.mxu1 %v667_v57 }
  0x2c   :  { %499 = vmatprep.mubr.f32.mxu1 %v706_v3  ;;  %704 = vmatpush1.msra.mxu1 %v666_v58 }
  0x2d   :  { %487 = vmatprep.mubr.f32.mxu0 %v706_v3  ;;  %687 = vmatmul.mubr.msk.f32.vlgmr.msra.gmra.mxu1 %vm58_vm1, %v17_v49 }
  0x2e   :  { %505 = vmatprep.mubr.f32.mxu1 %v706_v3 }
  0x2f   :  { %685 = vmatmul.mubr.msk.f32.gmra.mxu0 %vm58_vm1, %v856_v40 }
  0x30   :  { %493 = vmatprep.mubr.f32.mxu0 %v706_v3 }
  0x31   :  { %688 = vmatmul.mubr.msk.f32.gmra.mxu1 %vm58_vm1, %v18_v54 }
  0x33   :  { %686 = vmatmul.mubr.msk.f32.gmra.mxu0 %vm58_vm1, %v16_v45 }
  0xd2   :  { %v967_v61 = vpop.f32.mrf.mxu0 }
  0xd3   :  { %v969_v62 = vpop.f32.mrf.mxu1  ;;  %v186_v56 = vadd.f32 %v967_v61, %v860_v41 }
  0xd4   :  { %v149_v0 = vpop.f32.mrf.mxu0  ;;  %v345_v42 = vrot.slane %v969_v62, 1 }
  0xd5   :  { %v297_v1 = vpop.f32.mrf.mxu1  ;;  %v187_v2 = vadd.f32 %v177_v63, %v149_v0 }
  0xd6   :  { %v974_v3 = vpop.f32.mrf.mxu0  ;;  %v348_v9 = vrot.slane %v297_v1, 1 }
  0xd7   :  { %v976_v4 = vpop.f32.mrf.mxu1  ;;  %197 = vst.msk [vmem:[%s1179_s3 + $0x8] sm:$0xff] %vm32_vm2, %v187_v2  ;;  %v188_v57 = vadd.f32 %v974_v3, %v860_v41 }
  0xd8   :  { %v155_v6 = vpop.f32.mrf.mxu0  ;;  %v346_v43 = vrot.slane %v976_v4, 1 }
  0xd9   :  { %v303_v7 = vpop.f32.mrf.mxu1  ;;  %v189_v8 = vadd.f32 %v179_v5, %v155_v6 }
  0xda   :  { %v349_v10 = vrot.slane %v303_v7, 1  ;;  %v985_v11 = vpop.f32.mrf.mxu0  ;;  %v347_v53 = vsel %vm344_vm3, %v345_v42, %v346_v43 }
  0xdb   :  { %v307_v12 = vpop.f32.mrf.mxu1  ;;  %199 = vst.msk [vmem:[%s1179_s3 + $0x18] sm:$0xff] %vm32_vm2, %v189_v8  ;;  %v373_v2 = vadd.f32 %v347_v53, %v186_v56  ;;  %v190_v3 = vadd.f32 %v985_v11, %v860_v41 }
  0xdc   :  { %v161_v14 = vpop.f32.mrf.mxu0  ;;  %v350_v18 = vsel %vm344_vm3, %v348_v9, %v349_v10  ;;  %v351_v45 = vrot.slane %v307_v12, 1 }
  0xdd   :  { %v309_v15 = vpop.f32.mrf.mxu1  ;;  %v191_v16 = vadd.f32 %v181_v13, %v161_v14 }
  0xde   :  { %v325_v17 = vld [vmem:[%s1179_s3 + $0x8] sm:$0xff]  ;;  %v353_v19 = vrot.slane %v309_v15, 1  ;;  %v352_v58 = vsel %vm344_vm3, %v346_v43, %v351_v45 }
  0xdf   :  { %v165_v20 = vpop.f32.mrf.mxu0  ;;  %v374_v22 = vadd.f32 %v350_v18, %v325_v17  ;;  %201 = vst.msk [vmem:[%s1179_s3 + $0x28] sm:$0xff] %vm32_vm2, %v191_v16  ;;  %v375_v11 = vadd.f32 %v352_v58, %v188_v57 }
  0xe0   :  { %v313_v23 = vpop.f32.mrf.mxu1  ;;  %v354_v27 = vsel %vm344_vm3, %v349_v10, %v353_v19  ;;  %v192_v8 = vadd.f32 %v165_v20, %v860_v41 }
  0xe1   :  { %v167_v24 = vpop.f32.mrf.mxu0  ;;  %384 = vst.msk [vmem:[%s1179_s3 + $0x8] sm:$0xff] %vm32_vm2, %v374_v22  ;;  %v355_v48 = vrot.slane %v313_v23, 1 }
  0xe2   :  { %v193_v25 = vadd.f32 %v183_v21, %v167_v24  ;;  %v327_v26 = vld [vmem:[%s1179_s3 + $0x18] sm:$0xff]  ;;  %v315_v28 = vpop.f32.mrf.mxu1 }
  0xe3   :  { %v376_v29 = vadd.f32 %v354_v27, %v327_v26  ;;  %v357_v30 = vrot.slane %v315_v28, 1  ;;  %v356_v62 = vsel %vm344_vm3, %v351_v45, %v355_v48 }
  0xe4   :  { %203 = vst.msk [vmem:[%s1179_s3 + $0x38] sm:$0xff] %vm32_vm2, %v193_v25  ;;  %v377_v14 = vadd.f32 %v356_v62, %v190_v3 }
  0xe5   :  { %v171_v31 = vpop.f32.mrf.mxu0  ;;  %386 = vst.msk [vmem:[%s1179_s3 + $0x18] sm:$0xff] %vm32_vm2, %v376_v29  ;;  %v358_v35 = vsel %vm344_vm3, %v353_v19, %v357_v30 }
  0xe6   :  { %v194_v33 = vadd.f32 %v171_v31, %v860_v41  ;;  %v329_v34 = vld [vmem:[%s1179_s3 + $0x28] sm:$0xff]  ;;  %v319_v36 = vpop.f32.mrf.mxu1 }
  0xe7   :  { %v173_v37 = vpop.f32.mrf.mxu0  ;;  %v378_v38 = vadd.f32 %v358_v35, %v329_v34  ;;  %v359_v50 = vrot.slane %v319_v36, 1 }
  0xe8   :  { %204 = vst [vmem:[%s1179_s3 + $0x40] sm:$0xff] %v194_v33  ;;  %v195_v39 = vadd.f32 %v185_v32, %v173_v37  ;;  %v321_v40 = vpop.f32.mrf.mxu1  ;;  %v513_v19 = vld [vmem:[%s1179_s3 + $0x8] sm:$0xff] }
  0xe9   :  { %388 = vst.msk [vmem:[%s1179_s3 + $0x28] sm:$0xff] %vm32_vm2, %v378_v38  ;;  %v361_v44 = vrot.slane %v321_v40, 1  ;;  %v360_v4 = vsel %vm344_vm3, %v355_v48, %v359_v50 }
  0xea   :  { %205 = vst.msk [vmem:[%s1179_s3 + $0x48] sm:$0xff] %vm32_vm2, %v195_v39  ;;  %v379_v18 = vadd.f32 %v360_v4, %v192_v8 }
  0xeb   :  { %v331_v46 = vld [vmem:[%s1179_s3 + $0x38] sm:$0xff]  ;;  %v483_v47 = vpop.f32.mrf.mxu0  ;;  %v362_v49 = vsel %vm344_vm3, %v357_v30, %v361_v44 }
  0xec   :  { %v380_v51 = vadd.f32 %v362_v49, %v331_v46  ;;  %v533_v54 = vrot.slane %v483_v47, 2  ;;  %v515_v45 = vld [vmem:[%s1179_s3 + $0x18] sm:$0xff] }
  0xed   :  { %v485_v52 = vpop.f32.mrf.mxu0  ;;  %v501_v55 = vpop.f32.mrf.mxu1 }
  0xee   :  { %390 = vst.msk [vmem:[%s1179_s3 + $0x38] sm:$0xff] %vm32_vm2, %v380_v51  ;;  %v536_v61 = vrot.slane %v485_v52, 2  ;;  %v543_v6 = vrot.slane %v501_v55, 2 }
  0xef   :  { %v332_v59 = vld [vmem:[%s1179_s3 + $0x40] sm:$0x7f]  ;;  %v489_v60 = vpop.f32.mrf.mxu0  ;;  %v503_v1 = vpop.f32.mrf.mxu1 }
  0xf0   :  { %v381_v63 = vadd.f32 %v359_v50, %v332_v59  ;;  %v534_v0 = vrot.slane %v489_v60, 2  ;;  %v545_v41 = vrot.slane %v503_v1, 2  ;;  %v517_v50 = vld [vmem:[%s1179_s3 + $0x28] sm:$0xff] }
  0xf1   :  { %v333_v5 = vld [vmem:[%s1179_s3 + $0x48] sm:$0x7f]  ;;  %v491_v7 = vpop.f32.mrf.mxu0  ;;  %v507_v13 = vpop.f32.mrf.mxu1 }
  0xf2   :  { %391 = vst [vmem:[%s1179_s3 + $0x40] sm:$0x7f] %v381_v63  ;;  %v382_v9 = vadd.f32 %v361_v44, %v333_v5  ;;  %v535_v10 = vsel %vm532_vm5, %v533_v54, %v534_v0  ;;  %v537_v12 = vrot.slane %v491_v7, 2  ;;  %v547_v16 = vrot.slane %v507_v13, 2 }
  0xf3   :  { %v561_v15 = vadd.f32 %v535_v10, %v373_v2  ;;  %v495_v17 = vpop.f32.mrf.mxu0  ;;  %v509_v22 = vpop.f32.mrf.mxu1 }
  0xf4   :  { %393 = vst.msk [vmem:[%s1179_s3 + $0x48] sm:$0x7f] %vm392_vm4, %v382_v9  ;;  %v538_v20 = vsel %vm532_vm5, %v536_v61, %v537_v12  ;;  %v539_v21 = vrot.slane %v495_v17, 2  ;;  %v548_v25 = vsel %vm532_vm5, %v543_v6, %v547_v16  ;;  %v549_v30 = vrot.slane %v509_v22, 2 }
  0xf5   :  { %vm592_vm6 = vcmp.gt.f32.partialorder %v561_v15, 0.0  ;;  %v602_v23 = vmul.f32 0.25, %v561_v15  ;;  %v562_v24 = vadd.f32 %v538_v20, %v513_v19  ;;  %v497_v26 = vpop.f32.mrf.mxu0  ;;  %v567_v27 = vadd.f32 %v548_v25, %v379_v18  ;;  %v519_v34 = vld [vmem:[%s1179_s3 + $0x38] sm:$0xff] }
  0xf6   :  { %v540_v28 = vsel %vm532_vm5, %v534_v0, %v539_v21  ;;  %v544_v29 = vsel %vm532_vm5, %v539_v21, %v543_v6  ;;  %v541_v35 = vrot.slane %v497_v26, 2  ;;  %v550_v37 = vsel %vm532_vm5, %v545_v41, %v549_v30 }
  0xf7   :  { %v612_v31 = vsel %vm592_vm6, %v561_v15, %v602_v23  ;;  %572 = vst.msk [vmem:[%s1179_s3 + $0x8] sm:$0xff] %vm32_vm2, %v562_v24  ;;  %v563_v32 = vadd.f32 %v540_v28, %v375_v11  ;;  %v565_v33 = vadd.f32 %v544_v29, %v377_v14  ;;  %vm598_vm7 = vcmp.gt.f32.partialorder %v567_v27, 0.0 }
  0xf8   :  { %622 = vst [vmem:[%s1179_s3] sm:$0xff] %v612_v31  ;;  %v608_v36 = vmul.f32 0.25, %v567_v27  ;;  %v568_v44 = vadd.f32 %v550_v37, %v519_v34  ;;  %v542_v46 = vsel %vm532_vm5, %v537_v12, %v541_v35  ;;  %v546_v51 = vsel %vm532_vm5, %v541_v35, %v545_v41 }
  0xf9   :  { %v520_v38 = vld [vmem:[%s1179_s3 + $0x40] sm:$0x3f]  ;;  %vm594_vm9 = vcmp.gt.f32.partialorder %v563_v32, 0.0  ;;  %vm596_vm10 = vcmp.gt.f32.partialorder %v565_v33, 0.0  ;;  %v604_v39 = vmul.f32 0.25, %v563_v32  ;;  %v606_v40 = vmul.f32 0.25, %v565_v33 }
  0xfa   :  { %v569_v42 = vadd.f32 %v547_v16, %v520_v38  ;;  %v618_v43 = vsel %vm598_vm7, %v567_v27, %v608_v36  ;;  %v564_v52 = vadd.f32 %v542_v46, %v515_v45  ;;  %578 = vst.msk [vmem:[%s1179_s3 + $0x38] sm:$0xff] %vm32_vm2, %v568_v44  ;;  %v566_v54 = vadd.f32 %v546_v51, %v517_v50 }
  0xfb   :  { %628 = vst [vmem:[%s1179_s3 + $0x30] sm:$0xff] %v618_v43  ;;  %v614_v47 = vsel %vm594_vm9, %v563_v32, %v604_v39  ;;  %v616_v48 = vsel %vm596_vm10, %v565_v33, %v606_v40  ;;  %v521_v49 = vld [vmem:[%s1179_s3 + $0x48] sm:$0x3f] }
  0xfc   :  { %579 = vst [vmem:[%s1179_s3 + $0x40] sm:$0x3f] %v569_v42  ;;  %624 = vst [vmem:[%s1179_s3 + $0x10] sm:$0xff] %v614_v47  ;;  %v570_v53 = vadd.f32 %v549_v30, %v521_v49 }
  0xfd   :  { %626 = vst [vmem:[%s1179_s3 + $0x20] sm:$0xff] %v616_v48  ;;  %574 = vst.msk [vmem:[%s1179_s3 + $0x18] sm:$0xff] %vm32_vm2, %v564_v52 }
  0xfe   :  { %v583_v55 = vld [vmem:[%s1179_s3 + $0x8] sm:$0xff]  ;;  %581 = vst.msk [vmem:[%s1179_s3 + $0x48] sm:$0x3f] %vm580_vm8, %v570_v53 }
  0xff   :  { %576 = vst.msk [vmem:[%s1179_s3 + $0x28] sm:$0xff] %vm32_vm2, %v566_v54  ;;  %vm593_vm11 = vcmp.gt.f32.partialorder %v583_v55, 0.0  ;;  %v603_v56 = vmul.f32 0.25, %v583_v55 }
 0x101   :  { %v613_v57 = vsel %vm593_vm11, %v583_v55, %v603_v56  ;;  %v589_v59 = vld [vmem:[%s1179_s3 + $0x38] sm:$0xff] }
 0x102   :  { %623 = vst.msk [vmem:[%s1179_s3 + $0x8] sm:$0xff] %vm32_vm2, %v613_v57  ;;  %vm599_vm13 = vcmp.gt.f32.partialorder %v589_v59, 0.0  ;;  %v609_v62 = vmul.f32 0.25, %v589_v59 }
 0x103   :  { %v590_v58 = vld [vmem:[%s1179_s3 + $0x40] sm:$0xff] }
 0x104   :  { %vm600_vm12 = vcmp.gt.f32.partialorder %v590_v58, 0.0  ;;  %v610_v60 = vmul.f32 0.25, %v590_v58  ;;  %v585_v63 = vld [vmem:[%s1179_s3 + $0x18] sm:$0xff]  ;;  %v619_v4 = vsel %vm599_vm13, %v589_v59, %v609_v62 }
 0x105   :  { %v591_v61 = vld [vmem:[%s1179_s3 + $0x48] sm:$0xff]  ;;  %vm595_vm14 = vcmp.gt.f32.partialorder %v585_v63, 0.0  ;;  %v605_v1 = vmul.f32 0.25, %v585_v63  ;;  %629 = vst.msk [vmem:[%s1179_s3 + $0x38] sm:$0xff] %vm32_vm2, %v619_v4 }
 0x106   :  { %v587_v0 = vld [vmem:[%s1179_s3 + $0x28] sm:$0xff]  ;;  %v620_v2 = vsel %vm600_vm12, %v590_v58, %v610_v60  ;;  %vm601_vm15 = vcmp.gt.f32.partialorder %v591_v61, 0.0  ;;  %v611_v3 = vmul.f32 0.25, %v591_v61 }
 0x107   :  { %630 = vst [vmem:[%s1179_s3 + $0x40] sm:$0xff] %v620_v2  ;;  %vm597_vm0 = vcmp.gt.f32.partialorder %v587_v0, 0.0  ;;  %v607_v5 = vmul.f32 0.25, %v587_v0  ;;  %v615_v6 = vsel %vm595_vm14, %v585_v63, %v605_v1 }
 0x108   :  { %v621_v7 = vsel %vm601_vm15, %v591_v61, %v611_v3  ;;  %625 = vst.msk [vmem:[%s1179_s3 + $0x18] sm:$0xff] %vm32_vm2, %v615_v6 }
 0x109   :  { %631 = vst.msk [vmem:[%s1179_s3 + $0x48] sm:$0xff] %vm32_vm2, %v621_v7  ;;  %v617_v8 = vsel %vm597_vm0, %v587_v0, %v607_v5 }
 0x10a   :  { %627 = vst.msk [vmem:[%s1179_s3 + $0x28] sm:$0xff] %vm32_vm2, %v617_v8 }

</bundles_post_ra>
